<compile_context>
chip_gen: v6e
topology: v6e:2x2x1
jax: 0.10.0
libtpu: 0.0.40
codegen_flags: <defaults>
</compile_context>

<pallas_src>
import math
import functools

import jax
import jax.numpy as jnp
from jax.experimental import pallas as pl
from jax.experimental.pallas import tpu as pltpu


def _mha_kernel(q_ref, k_ref, v_ref, w_ref, b_ref, x_ref, *maybe_attn,
                heads, head_dim, inv_scale, matmul_dtype, approx_recip):
    """One (batch, q-tile) step.

    q_ref: (tq, H)   k_ref/v_ref: (Lk, H)
    w_ref: (4, H, H) packed [Wq, Wk, Wv, Wo] (in, out)
    b_ref: (4, H)    packed [bq, bk, bv, bo]
    x_ref: (tq, H)   maybe_attn[0]: (heads, tq, Lk) (optional)
    """
    attn_ref = maybe_attn[0] if maybe_attn else None
    H = heads * head_dim

    b_all = b_ref[...]                       # (4, H) f32
    bq, bk, bv, bo = (b_all[i:i + 1] for i in range(4))   # each (1, H)

    def proj(x_r, w_idx, bias):
        x = x_r[...].astype(matmul_dtype)
        w = w_ref[w_idx].astype(matmul_dtype)
        return jnp.dot(x, w, preferred_element_type=jnp.float32) + bias

    # Projections (big MXU matmuls). 1/scale folded into Q (cheap (tq,H) mul).
    Q = proj(q_ref, 0, bq) * inv_scale       # (tq, H) f32
    K = proj(k_ref, 1, bk)                   # (Lk, H) f32
    V = proj(v_ref, 2, bv)                   # (Lk, H) f32
    Wo = w_ref[3]                            # (H, H)  f32

    Qm = Q.astype(matmul_dtype)
    Km = K.astype(matmul_dtype)
    Vm = V.astype(matmul_dtype)

    tq = Q.shape[0]
    out = jnp.zeros((tq, H), jnp.float32)

    # Unrolled per-head loop: every contraction is a plain 2-D MXU dot,
    # no (L, heads, head_dim) reshapes / XLU relayouts.
    for h in range(heads):
        sl = slice(h * head_dim, (h + 1) * head_dim)
        Qh = Qm[:, sl]                       # (tq, d)
        Kh = Km[:, sl]                       # (Lk, d)
        Vh = Vm[:, sl]                       # (Lk, d)

        # energy[q, k] = sum_d Qh[q, d] * Kh[k, d]   (already scaled via Q)
        energy = jax.lax.dot_general(
            Qh, Kh, (((1,), (1,)), ((), ())),
            preferred_element_type=jnp.float32)          # (tq, Lk) f32

        # softmax over keys (f32; reciprocal goes to the EUP slot)
        m = jnp.max(energy, axis=-1, keepdims=True)
        e = jnp.exp(energy - m)
        denom = jnp.sum(e, axis=-1, keepdims=True)
        p = e * pl.reciprocal(denom, approx=approx_recip)  # (tq, Lk) f32

        if attn_ref is not None:
            attn_ref[h] = p.astype(attn_ref.dtype)

        # context_h = P @ Vh  -> (tq, d)
        ctx = jnp.dot(p.astype(matmul_dtype), Vh,
                      preferred_element_type=jnp.float32)

        # Fold the output projection per head:
        #   context @ Wo == sum_h ctx_h @ Wo[h*d:(h+1)*d, :]
        wo_h = Wo[sl, :].astype(matmul_dtype)              # (d, H)
        out = out + jnp.dot(ctx.astype(matmul_dtype), wo_h,
                            preferred_element_type=jnp.float32)

    x_ref[...] = (out + bo).astype(x_ref.dtype)


def multi_head_attention(query, key, value, params, *, heads,
                         block_q=None,
                         matmul_dtype=jnp.bfloat16,
                         approx_reciprocal=True,
                         attn_dtype=jnp.float32,
                         return_attention=True):
    """query/key/value: [B, L, H] float32. params: dict of projection weights.

    Returns (x, attention) like the PyTorch module; attention is None when
    return_attention=False (skips the O(L^2) HBM writeback).
    """
    B, Lq, H = query.shape
    Lk = key.shape[1]
    assert H % heads == 0
    head_dim = H // heads
    inv_scale = 1.0 / math.sqrt(float(head_dim))

    # q-tile: full Lq for short sequences, otherwise a 128-row tile.
    if block_q is None:
        block_q = Lq if Lq <= 128 else 128
    if Lq % block_q != 0:
        # TODO(synk): ragged Lq would need tail-tile masking; fall back to one tile.
        block_q = Lq

    # Pack the four weights / biases into single inputs (fewer tiny blocks).
    w_packed = jnp.stack([params["wq"], params["wk"], params["wv"], params["wo"]])
    b_packed = jnp.stack([params["bq"], params["bk"], params["bv"], params["bo"]])

    kernel = functools.partial(
        _mha_kernel, heads=heads, head_dim=head_dim, inv_scale=inv_scale,
        matmul_dtype=matmul_dtype, approx_recip=approx_reciprocal)

    grid = (B, Lq // block_q)

    in_specs = [
        pl.BlockSpec((pl.Squeezed(), block_q, H), lambda b, i: (b, i, 0)),  # query
        pl.BlockSpec((pl.Squeezed(), Lk, H), lambda b, i: (b, 0, 0)),       # key
        pl.BlockSpec((pl.Squeezed(), Lk, H), lambda b, i: (b, 0, 0)),       # value
        pl.BlockSpec((4, H, H), lambda b, i: (0, 0, 0)),                    # W packed
        pl.BlockSpec((4, H), lambda b, i: (0, 0)),                          # b packed
    ]

    out_shapes = [jax.ShapeDtypeStruct((B, Lq, H), query.dtype)]
    out_specs = [pl.BlockSpec((pl.Squeezed(), block_q, H), lambda b, i: (b, i, 0))]
    if return_attention:
        out_shapes.append(jax.ShapeDtypeStruct((B, heads, Lq, Lk), attn_dtype))
        out_specs.append(pl.BlockSpec((pl.Squeezed(), heads, block_q, Lk),
                                      lambda b, i: (b, 0, i, 0)))

    outs = pl.pallas_call(
        kernel,
        out_shape=tuple(out_shapes),
        grid_spec=pltpu.PrefetchScalarGridSpec(
            num_scalar_prefetch=0,
            grid=grid,
            in_specs=in_specs,
            out_specs=tuple(out_specs),
        ),
        compiler_params=pltpu.CompilerParams(
            dimension_semantics=("parallel", "parallel"),
            vmem_limit_bytes=32 * 1024 * 1024,
        ),
    )(query, key, value, w_packed, b_packed)

    if return_attention:
        return outs[0], outs[1]
    return outs[0], None


def _reference(query, key, value, params, *, heads):
    """Pure-JAX reference mirroring the PyTorch forward (eval mode)."""
    B, Lq, H = query.shape
    head_dim = H // heads
    scale = math.sqrt(float(head_dim))

    def lin(x, w, b):
        return x @ w + b  # w stored as (in, out)

    Q = lin(query, params["wq"], params["bq"])
    K = lin(key, params["wk"], params["bk"])
    V = lin(value, params["wv"], params["bv"])

    Q = Q.reshape(B, -1, heads, head_dim).transpose(0, 2, 1, 3)
    K = K.reshape(B, -1, heads, head_dim).transpose(0, 2, 1, 3)
    V = V.reshape(B, -1, heads, head_dim).transpose(0, 2, 1, 3)

    energy = jnp.einsum("bhqd,bhkd->bhqk", Q, K) / scale
    attention = jax.nn.softmax(energy, axis=-1)
    x = jnp.einsum("bhqk,bhkd->bhqd", attention, V)
    x = x.transpose(0, 2, 1, 3).reshape(B, -1, H)
    x = lin(x, params["wo"], params["bo"])
    return x, attention


def init_params(key, hid_dim):
    ks = jax.random.split(key, 8)
    bound = 1.0 / math.sqrt(hid_dim)

    def w(k):  # stored as (in_features, out_features)
        return jax.random.uniform(k, (hid_dim, hid_dim), jnp.float32, -bound, bound)

    def b(k):
        return jax.random.uniform(k, (hid_dim,), jnp.float32, -bound, bound)

    return {
        "wq": w(ks[0]), "bq": b(ks[1]),
        "wk": w(ks[2]), "bk": b(ks[3]),
        "wv": w(ks[4]), "bv": b(ks[5]),
        "wo": w(ks[6]), "bo": b(ks[7]),
    }


if __name__ == "__main__":
    B, L, HID, HEADS = 2, 8, 32, 4

    root = jax.random.PRNGKey(0)
    k_params, k_q, k_k, k_v = jax.random.split(root, 4)

    params = init_params(k_params, HID)
    query = jax.random.normal(k_q, (B, L, HID), jnp.float32)
    key = jax.random.normal(k_k, (B, L, HID), jnp.float32)
    value = jax.random.normal(k_v, (B, L, HID), jnp.float32)

    x_ref, attn_ref = _reference(query, key, value, params, heads=HEADS)

    # 1) Exact path (f32 matmuls, exact reciprocal): tight check.
    x, attn = multi_head_attention(
        query, key, value, params, heads=HEADS,
        matmul_dtype=jnp.float32, approx_reciprocal=False)
    jax.block_until_ready((x, attn))
    assert x.shape == (B, L, HID)
    assert attn.shape == (B, HEADS, L, L)
    assert jnp.allclose(x, x_ref, atol=1e-4, rtol=1e-4)
    assert jnp.allclose(attn, attn_ref, atol=1e-5, rtol=1e-4)

    # 2) Fast path (defaults: bf16 MXU operands, approx EUP reciprocal).
    x_fast, attn_fast = multi_head_attention(query, key, value, params, heads=HEADS)
    jax.block_until_ready((x_fast, attn_fast))
    assert jnp.allclose(x_fast, x_ref, atol=3e-2, rtol=3e-2)
    assert jnp.allclose(attn_fast, attn_ref, atol=3e-2, rtol=3e-2)

    # 3) No-attention-weights fast path (skips the O(L^2) HBM writeback).
    x_only, none_attn = multi_head_attention(query, key, value, params,
                                             heads=HEADS, return_attention=False)
    jax.block_until_ready(x_only)
    assert none_attn is None
    assert jnp.allclose(x_only, x_ref, atol=3e-2, rtol=3e-2)

    print("KERNEL_OK")
</pallas_src>

<mosaic_0001>
module attributes {stable_mosaic.version = 11 : i64} {
  func.func @_mha_kernel(%arg0: i32, %arg1: i32, %arg2: memref<1x8x32xf32, #tpu.memory_space<vmem>>, %arg3: memref<1x8x32xf32, #tpu.memory_space<vmem>>, %arg4: memref<1x8x32xf32, #tpu.memory_space<vmem>>, %arg5: memref<4x32x32xf32, #tpu.memory_space<vmem>>, %arg6: memref<4x32xf32, #tpu.memory_space<vmem>>, %arg7: memref<1x8x32xf32, #tpu.memory_space<vmem>>, %arg8: memref<1x4x8x8xf32, #tpu.memory_space<vmem>>) attributes {dimension_semantics = [#tpu.dimension_semantics<parallel>, #tpu.dimension_semantics<parallel>], iteration_bounds = array<i64: 2, 1>, scalar_prefetch = 0 : i64, scratch_operands = 0 : i64, tpu.core_type = #tpu.core_type<tc>, window_params = [{transform_indices = @transform_0, window_bounds = array<i64: 1, 8, 32>}, {transform_indices = @transform_1, window_bounds = array<i64: 1, 8, 32>}, {transform_indices = @transform_2, window_bounds = array<i64: 1, 8, 32>}, {pipeline_mode = #tpu.pipeline_mode<synchronous>, transform_indices = @transform_3, window_bounds = array<i64: 4, 32, 32>}, {pipeline_mode = #tpu.pipeline_mode<synchronous>, transform_indices = @transform_4, window_bounds = array<i64: 4, 32>}, {transform_indices = @transform_5, window_bounds = array<i64: 1, 8, 32>}, {transform_indices = @transform_6, window_bounds = array<i64: 1, 4, 8, 8>}]} {
    %c0 = arith.constant 0 : index
    %c0_0 = arith.constant 0 : index
    %0 = vector.load %arg6[%c0, %c0_0] : memref<4x32xf32, #tpu.memory_space<vmem>>, vector<4x32xf32>
    %1 = vector.extract_strided_slice %0 {offsets = [0, 0], sizes = [1, 32], strides = [1, 1]} : vector<4x32xf32> to vector<1x32xf32>
    %2 = vector.extract_strided_slice %0 {offsets = [1, 0], sizes = [1, 32], strides = [1, 1]} : vector<4x32xf32> to vector<1x32xf32>
    %3 = vector.extract_strided_slice %0 {offsets = [2, 0], sizes = [1, 32], strides = [1, 1]} : vector<4x32xf32> to vector<1x32xf32>
    %4 = vector.extract_strided_slice %0 {offsets = [3, 0], sizes = [1, 32], strides = [1, 1]} : vector<4x32xf32> to vector<1x32xf32>
    %c0_1 = arith.constant 0 : index
    %c0_2 = arith.constant 0 : index
    %c0_3 = arith.constant 0 : index
    %5 = vector.load %arg2[%c0_1, %c0_2, %c0_3] : memref<1x8x32xf32, #tpu.memory_space<vmem>>, vector<1x8x32xf32>
    %6 = vector.shape_cast %5 : vector<1x8x32xf32> to vector<8x32xf32>
    %c0_4 = arith.constant 0 : index
    %c0_5 = arith.constant 0 : index
    %c0_6 = arith.constant 0 : index
    %7 = vector.load %arg5[%c0_4, %c0_5, %c0_6] : memref<4x32x32xf32, #tpu.memory_space<vmem>>, vector<1x32x32xf32>
    %8 = vector.shape_cast %7 : vector<1x32x32xf32> to vector<32x32xf32>
    %cst = arith.constant dense<0.000000e+00> : vector<8x32xf32>
    %9 = tpu.matmul %6, %8, %cst {dimension_numbers = #tpu.dot_dimension_numbers<[1], [0], [0], [1], [0, 0, 1, 1], [], []>} : vector<8x32xf32>, vector<32x32xf32>, vector<8x32xf32> -> vector<8x32xf32>
    %10 = vector.broadcast %1 : vector<1x32xf32> to vector<8x32xf32>
    %11 = arith.addf %9, %10 : vector<8x32xf32>
    %cst_7 = arith.constant 0.353553385 : f32
    %12 = vector.broadcast %cst_7 : f32 to vector<8x32xf32>
    %13 = arith.mulf %11, %12 : vector<8x32xf32>
    %c0_8 = arith.constant 0 : index
    %c0_9 = arith.constant 0 : index
    %c0_10 = arith.constant 0 : index
    %14 = vector.load %arg3[%c0_8, %c0_9, %c0_10] : memref<1x8x32xf32, #tpu.memory_space<vmem>>, vector<1x8x32xf32>
    %15 = vector.shape_cast %14 : vector<1x8x32xf32> to vector<8x32xf32>
    %c1 = arith.constant 1 : index
    %c0_11 = arith.constant 0 : index
    %c0_12 = arith.constant 0 : index
    %16 = vector.load %arg5[%c1, %c0_11, %c0_12] : memref<4x32x32xf32, #tpu.memory_space<vmem>>, vector<1x32x32xf32>
    %17 = vector.shape_cast %16 : vector<1x32x32xf32> to vector<32x32xf32>
    %cst_13 = arith.constant dense<0.000000e+00> : vector<8x32xf32>
    %18 = tpu.matmul %15, %17, %cst_13 {dimension_numbers = #tpu.dot_dimension_numbers<[1], [0], [0], [1], [0, 0, 1, 1], [], []>} : vector<8x32xf32>, vector<32x32xf32>, vector<8x32xf32> -> vector<8x32xf32>
    %19 = vector.broadcast %2 : vector<1x32xf32> to vector<8x32xf32>
    %20 = arith.addf %18, %19 : vector<8x32xf32>
    %c0_14 = arith.constant 0 : index
    %c0_15 = arith.constant 0 : index
    %c0_16 = arith.constant 0 : index
    %21 = vector.load %arg4[%c0_14, %c0_15, %c0_16] : memref<1x8x32xf32, #tpu.memory_space<vmem>>, vector<1x8x32xf32>
    %22 = vector.shape_cast %21 : vector<1x8x32xf32> to vector<8x32xf32>
    %c2 = arith.constant 2 : index
    %c0_17 = arith.constant 0 : index
    %c0_18 = arith.constant 0 : index
    %23 = vector.load %arg5[%c2, %c0_17, %c0_18] : memref<4x32x32xf32, #tpu.memory_space<vmem>>, vector<1x32x32xf32>
    %24 = vector.shape_cast %23 : vector<1x32x32xf32> to vector<32x32xf32>
    %cst_19 = arith.constant dense<0.000000e+00> : vector<8x32xf32>
    %25 = tpu.matmul %22, %24, %cst_19 {dimension_numbers = #tpu.dot_dimension_numbers<[1], [0], [0], [1], [0, 0, 1, 1], [], []>} : vector<8x32xf32>, vector<32x32xf32>, vector<8x32xf32> -> vector<8x32xf32>
    %26 = vector.broadcast %3 : vector<1x32xf32> to vector<8x32xf32>
    %27 = arith.addf %25, %26 : vector<8x32xf32>
    %c3 = arith.constant 3 : index
    %c0_20 = arith.constant 0 : index
    %c0_21 = arith.constant 0 : index
    %28 = vector.load %arg5[%c3, %c0_20, %c0_21] : memref<4x32x32xf32, #tpu.memory_space<vmem>>, vector<1x32x32xf32>
    %29 = vector.shape_cast %28 : vector<1x32x32xf32> to vector<32x32xf32>
    %cst_22 = arith.constant 0.000000e+00 : f32
    %30 = vector.broadcast %cst_22 : f32 to vector<8x32xf32>
    %31 = vector.extract_strided_slice %13 {offsets = [0, 0], sizes = [8, 8], strides = [1, 1]} : vector<8x32xf32> to vector<8x8xf32>
    %32 = vector.extract_strided_slice %20 {offsets = [0, 0], sizes = [8, 8], strides = [1, 1]} : vector<8x32xf32> to vector<8x8xf32>
    %33 = vector.extract_strided_slice %27 {offsets = [0, 0], sizes = [8, 8], strides = [1, 1]} : vector<8x32xf32> to vector<8x8xf32>
    %cst_23 = arith.constant dense<0.000000e+00> : vector<8x8xf32>
    %34 = tpu.matmul %31, %32, %cst_23 {dimension_numbers = #tpu.dot_dimension_numbers<[1], [1], [0], [0], [0, 0, 1, 0], [], []>} : vector<8x8xf32>, vector<8x8xf32>, vector<8x8xf32> -> vector<8x8xf32>
    %cst_24 = arith.constant dense<0xFF800000> : vector<8xf32>
    %35 = vector.multi_reduction <maximumf>, %34, %cst_24 [1] : vector<8x8xf32> to vector<8xf32>
    %36 = vector.shape_cast %35 : vector<8xf32> to vector<8x1xf32>
    %37 = vector.broadcast %36 : vector<8x1xf32> to vector<8x8xf32>
    %38 = arith.subf %34, %37 : vector<8x8xf32>
    %39 = math.exp %38 : vector<8x8xf32>
    %cst_25 = arith.constant dense<0.000000e+00> : vector<8xf32>
    %40 = vector.multi_reduction <add>, %39, %cst_25 [1] : vector<8x8xf32> to vector<8xf32>
    %41 = vector.shape_cast %40 : vector<8xf32> to vector<8x1xf32>
    %42 = tpu.reciprocal %41 : vector<8x1xf32> -> vector<8x1xf32>
    %43 = vector.broadcast %42 : vector<8x1xf32> to vector<8x8xf32>
    %44 = arith.mulf %39, %43 : vector<8x8xf32>
    %c0_26 = arith.constant 0 : index
    %c0_27 = arith.constant 0 : index
    %c0_28 = arith.constant 0 : index
    %c0_29 = arith.constant 0 : index
    %45 = vector.load %arg8[%c0_26, %c0_27, %c0_28, %c0_29] : memref<1x4x8x8xf32, #tpu.memory_space<vmem>>, vector<1x1x8x8xf32>
    %46 = vector.shape_cast %45 : vector<1x1x8x8xf32> to vector<8x8xf32>
    %47 = vector.shape_cast %44 : vector<8x8xf32> to vector<1x1x8x8xf32>
    tpu.vector_store %arg8[%c0_26, %c0_27, %c0_28, %c0_29], %47 {strides = array<i32>} : memref<1x4x8x8xf32, #tpu.memory_space<vmem>>, vector<1x1x8x8xf32>,
    %cst_30 = arith.constant dense<0.000000e+00> : vector<8x8xf32>
    %48 = tpu.matmul %44, %33, %cst_30 {dimension_numbers = #tpu.dot_dimension_numbers<[1], [0], [0], [1], [0, 0, 1, 1], [], []>} : vector<8x8xf32>, vector<8x8xf32>, vector<8x8xf32> -> vector<8x8xf32>
    %49 = vector.extract_strided_slice %29 {offsets = [0, 0], sizes = [8, 32], strides = [1, 1]} : vector<32x32xf32> to vector<8x32xf32>
    %cst_31 = arith.constant dense<0.000000e+00> : vector<8x32xf32>
    %50 = tpu.matmul %48, %49, %cst_31 {dimension_numbers = #tpu.dot_dimension_numbers<[1], [0], [0], [1], [0, 0, 1, 1], [], []>} : vector<8x8xf32>, vector<8x32xf32>, vector<8x32xf32> -> vector<8x32xf32>
    %51 = arith.addf %30, %50 : vector<8x32xf32>
    %52 = vector.extract_strided_slice %13 {offsets = [0, 8], sizes = [8, 8], strides = [1, 1]} : vector<8x32xf32> to vector<8x8xf32>
    %53 = vector.extract_strided_slice %20 {offsets = [0, 8], sizes = [8, 8], strides = [1, 1]} : vector<8x32xf32> to vector<8x8xf32>
    %54 = vector.extract_strided_slice %27 {offsets = [0, 8], sizes = [8, 8], strides = [1, 1]} : vector<8x32xf32> to vector<8x8xf32>
    %cst_32 = arith.constant dense<0.000000e+00> : vector<8x8xf32>
    %55 = tpu.matmul %52, %53, %cst_32 {dimension_numbers = #tpu.dot_dimension_numbers<[1], [1], [0], [0], [0, 0, 1, 0], [], []>} : vector<8x8xf32>, vector<8x8xf32>, vector<8x8xf32> -> vector<8x8xf32>
    %cst_33 = arith.constant dense<0xFF800000> : vector<8xf32>
    %56 = vector.multi_reduction <maximumf>, %55, %cst_33 [1] : vector<8x8xf32> to vector<8xf32>
    %57 = vector.shape_cast %56 : vector<8xf32> to vector<8x1xf32>
    %58 = vector.broadcast %57 : vector<8x1xf32> to vector<8x8xf32>
    %59 = arith.subf %55, %58 : vector<8x8xf32>
    %60 = math.exp %59 : vector<8x8xf32>
    %cst_34 = arith.constant dense<0.000000e+00> : vector<8xf32>
    %61 = vector.multi_reduction <add>, %60, %cst_34 [1] : vector<8x8xf32> to vector<8xf32>
    %62 = vector.shape_cast %61 : vector<8xf32> to vector<8x1xf32>
    %63 = tpu.reciprocal %62 : vector<8x1xf32> -> vector<8x1xf32>
    %64 = vector.broadcast %63 : vector<8x1xf32> to vector<8x8xf32>
    %65 = arith.mulf %60, %64 : vector<8x8xf32>
    %c0_35 = arith.constant 0 : index
    %c1_36 = arith.constant 1 : index
    %c0_37 = arith.constant 0 : index
    %c0_38 = arith.constant 0 : index
    %66 = vector.load %arg8[%c0_35, %c1_36, %c0_37, %c0_38] : memref<1x4x8x8xf32, #tpu.memory_space<vmem>>, vector<1x1x8x8xf32>
    %67 = vector.shape_cast %66 : vector<1x1x8x8xf32> to vector<8x8xf32>
    %68 = vector.shape_cast %65 : vector<8x8xf32> to vector<1x1x8x8xf32>
    tpu.vector_store %arg8[%c0_35, %c1_36, %c0_37, %c0_38], %68 {strides = array<i32>} : memref<1x4x8x8xf32, #tpu.memory_space<vmem>>, vector<1x1x8x8xf32>,
    %cst_39 = arith.constant dense<0.000000e+00> : vector<8x8xf32>
    %69 = tpu.matmul %65, %54, %cst_39 {dimension_numbers = #tpu.dot_dimension_numbers<[1], [0], [0], [1], [0, 0, 1, 1], [], []>} : vector<8x8xf32>, vector<8x8xf32>, vector<8x8xf32> -> vector<8x8xf32>
    %70 = vector.extract_strided_slice %29 {offsets = [8, 0], sizes = [8, 32], strides = [1, 1]} : vector<32x32xf32> to vector<8x32xf32>
    %cst_40 = arith.constant dense<0.000000e+00> : vector<8x32xf32>
    %71 = tpu.matmul %69, %70, %cst_40 {dimension_numbers = #tpu.dot_dimension_numbers<[1], [0], [0], [1], [0, 0, 1, 1], [], []>} : vector<8x8xf32>, vector<8x32xf32>, vector<8x32xf32> -> vector<8x32xf32>
    %72 = arith.addf %51, %71 : vector<8x32xf32>
    %73 = vector.extract_strided_slice %13 {offsets = [0, 16], sizes = [8, 8], strides = [1, 1]} : vector<8x32xf32> to vector<8x8xf32>
    %74 = vector.extract_strided_slice %20 {offsets = [0, 16], sizes = [8, 8], strides = [1, 1]} : vector<8x32xf32> to vector<8x8xf32>
    %75 = vector.extract_strided_slice %27 {offsets = [0, 16], sizes = [8, 8], strides = [1, 1]} : vector<8x32xf32> to vector<8x8xf32>
    %cst_41 = arith.constant dense<0.000000e+00> : vector<8x8xf32>
    %76 = tpu.matmul %73, %74, %cst_41 {dimension_numbers = #tpu.dot_dimension_numbers<[1], [1], [0], [0], [0, 0, 1, 0], [], []>} : vector<8x8xf32>, vector<8x8xf32>, vector<8x8xf32> -> vector<8x8xf32>
    %cst_42 = arith.constant dense<0xFF800000> : vector<8xf32>
    %77 = vector.multi_reduction <maximumf>, %76, %cst_42 [1] : vector<8x8xf32> to vector<8xf32>
    %78 = vector.shape_cast %77 : vector<8xf32> to vector<8x1xf32>
    %79 = vector.broadcast %78 : vector<8x1xf32> to vector<8x8xf32>
    %80 = arith.subf %76, %79 : vector<8x8xf32>
    %81 = math.exp %80 : vector<8x8xf32>
    %cst_43 = arith.constant dense<0.000000e+00> : vector<8xf32>
    %82 = vector.multi_reduction <add>, %81, %cst_43 [1] : vector<8x8xf32> to vector<8xf32>
    %83 = vector.shape_cast %82 : vector<8xf32> to vector<8x1xf32>
    %84 = tpu.reciprocal %83 : vector<8x1xf32> -> vector<8x1xf32>
    %85 = vector.broadcast %84 : vector<8x1xf32> to vector<8x8xf32>
    %86 = arith.mulf %81, %85 : vector<8x8xf32>
    %c0_44 = arith.constant 0 : index
    %c2_45 = arith.constant 2 : index
    %c0_46 = arith.constant 0 : index
    %c0_47 = arith.constant 0 : index
    %87 = vector.load %arg8[%c0_44, %c2_45, %c0_46, %c0_47] : memref<1x4x8x8xf32, #tpu.memory_space<vmem>>, vector<1x1x8x8xf32>
    %88 = vector.shape_cast %87 : vector<1x1x8x8xf32> to vector<8x8xf32>
    %89 = vector.shape_cast %86 : vector<8x8xf32> to vector<1x1x8x8xf32>
    tpu.vector_store %arg8[%c0_44, %c2_45, %c0_46, %c0_47], %89 {strides = array<i32>} : memref<1x4x8x8xf32, #tpu.memory_space<vmem>>, vector<1x1x8x8xf32>,
    %cst_48 = arith.constant dense<0.000000e+00> : vector<8x8xf32>
    %90 = tpu.matmul %86, %75, %cst_48 {dimension_numbers = #tpu.dot_dimension_numbers<[1], [0], [0], [1], [0, 0, 1, 1], [], []>} : vector<8x8xf32>, vector<8x8xf32>, vector<8x8xf32> -> vector<8x8xf32>
    %91 = vector.extract_strided_slice %29 {offsets = [16, 0], sizes = [8, 32], strides = [1, 1]} : vector<32x32xf32> to vector<8x32xf32>
    %cst_49 = arith.constant dense<0.000000e+00> : vector<8x32xf32>
    %92 = tpu.matmul %90, %91, %cst_49 {dimension_numbers = #tpu.dot_dimension_numbers<[1], [0], [0], [1], [0, 0, 1, 1], [], []>} : vector<8x8xf32>, vector<8x32xf32>, vector<8x32xf32> -> vector<8x32xf32>
    %93 = arith.addf %72, %92 : vector<8x32xf32>
    %94 = vector.extract_strided_slice %13 {offsets = [0, 24], sizes = [8, 8], strides = [1, 1]} : vector<8x32xf32> to vector<8x8xf32>
    %95 = vector.extract_strided_slice %20 {offsets = [0, 24], sizes = [8, 8], strides = [1, 1]} : vector<8x32xf32> to vector<8x8xf32>
    %96 = vector.extract_strided_slice %27 {offsets = [0, 24], sizes = [8, 8], strides = [1, 1]} : vector<8x32xf32> to vector<8x8xf32>
    %cst_50 = arith.constant dense<0.000000e+00> : vector<8x8xf32>
    %97 = tpu.matmul %94, %95, %cst_50 {dimension_numbers = #tpu.dot_dimension_numbers<[1], [1], [0], [0], [0, 0, 1, 0], [], []>} : vector<8x8xf32>, vector<8x8xf32>, vector<8x8xf32> -> vector<8x8xf32>
    %cst_51 = arith.constant dense<0xFF800000> : vector<8xf32>
    %98 = vector.multi_reduction <maximumf>, %97, %cst_51 [1] : vector<8x8xf32> to vector<8xf32>
    %99 = vector.shape_cast %98 : vector<8xf32> to vector<8x1xf32>
    %100 = vector.broadcast %99 : vector<8x1xf32> to vector<8x8xf32>
    %101 = arith.subf %97, %100 : vector<8x8xf32>
    %102 = math.exp %101 : vector<8x8xf32>
    %cst_52 = arith.constant dense<0.000000e+00> : vector<8xf32>
    %103 = vector.multi_reduction <add>, %102, %cst_52 [1] : vector<8x8xf32> to vector<8xf32>
    %104 = vector.shape_cast %103 : vector<8xf32> to vector<8x1xf32>
    %105 = tpu.reciprocal %104 : vector<8x1xf32> -> vector<8x1xf32>
    %106 = vector.broadcast %105 : vector<8x1xf32> to vector<8x8xf32>
    %107 = arith.mulf %102, %106 : vector<8x8xf32>
    %c0_53 = arith.constant 0 : index
    %c3_54 = arith.constant 3 : index
    %c0_55 = arith.constant 0 : index
    %c0_56 = arith.constant 0 : index
    %108 = vector.load %arg8[%c0_53, %c3_54, %c0_55, %c0_56] : memref<1x4x8x8xf32, #tpu.memory_space<vmem>>, vector<1x1x8x8xf32>
    %109 = vector.shape_cast %108 : vector<1x1x8x8xf32> to vector<8x8xf32>
    %110 = vector.shape_cast %107 : vector<8x8xf32> to vector<1x1x8x8xf32>
    tpu.vector_store %arg8[%c0_53, %c3_54, %c0_55, %c0_56], %110 {strides = array<i32>} : memref<1x4x8x8xf32, #tpu.memory_space<vmem>>, vector<1x1x8x8xf32>,
    %cst_57 = arith.constant dense<0.000000e+00> : vector<8x8xf32>
    %111 = tpu.matmul %107, %96, %cst_57 {dimension_numbers = #tpu.dot_dimension_numbers<[1], [0], [0], [1], [0, 0, 1, 1], [], []>} : vector<8x8xf32>, vector<8x8xf32>, vector<8x8xf32> -> vector<8x8xf32>
    %112 = vector.extract_strided_slice %29 {offsets = [24, 0], sizes = [8, 32], strides = [1, 1]} : vector<32x32xf32> to vector<8x32xf32>
    %cst_58 = arith.constant dense<0.000000e+00> : vector<8x32xf32>
    %113 = tpu.matmul %111, %112, %cst_58 {dimension_numbers = #tpu.dot_dimension_numbers<[1], [0], [0], [1], [0, 0, 1, 1], [], []>} : vector<8x8xf32>, vector<8x32xf32>, vector<8x32xf32> -> vector<8x32xf32>
    %114 = arith.addf %93, %113 : vector<8x32xf32>
    %115 = vector.broadcast %4 : vector<1x32xf32> to vector<8x32xf32>
    %116 = arith.addf %114, %115 : vector<8x32xf32>
    %c0_59 = arith.constant 0 : index
    %c0_60 = arith.constant 0 : index
    %c0_61 = arith.constant 0 : index
    %117 = vector.load %arg7[%c0_59, %c0_60, %c0_61] : memref<1x8x32xf32, #tpu.memory_space<vmem>>, vector<1x8x32xf32>
    %118 = vector.shape_cast %117 : vector<1x8x32xf32> to vector<8x32xf32>
    %119 = vector.shape_cast %116 : vector<8x32xf32> to vector<1x8x32xf32>
    tpu.vector_store %arg7[%c0_59, %c0_60, %c0_61], %119 {strides = array<i32>} : memref<1x8x32xf32, #tpu.memory_space<vmem>>, vector<1x8x32xf32>,
    return
  }
  func.func @transform_0(%arg0: i32, %arg1: i32) -> (i32, i32, i32) {
    %c0_i32 = arith.constant 0 : i32
    %c0_i32_0 = arith.constant 0 : i32
    return %arg0, %arg1, %c0_i32 : i32, i32, i32
  }
  func.func @transform_1(%arg0: i32, %arg1: i32) -> (i32, i32, i32) {
    %c0_i32 = arith.constant 0 : i32
    %c0_i32_0 = arith.constant 0 : i32
    %c0_i32_1 = arith.constant 0 : i32
    return %arg0, %c0_i32, %c0_i32_0 : i32, i32, i32
  }
  func.func @transform_2(%arg0: i32, %arg1: i32) -> (i32, i32, i32) {
    %c0_i32 = arith.constant 0 : i32
    %c0_i32_0 = arith.constant 0 : i32
    %c0_i32_1 = arith.constant 0 : i32
    return %arg0, %c0_i32, %c0_i32_0 : i32, i32, i32
  }
  func.func @transform_3(%arg0: i32, %arg1: i32) -> (i32, i32, i32) {
    %c0_i32 = arith.constant 0 : i32
    %c0_i32_0 = arith.constant 0 : i32
    %c0_i32_1 = arith.constant 0 : i32
    %c0_i32_2 = arith.constant 0 : i32
    return %c0_i32, %c0_i32_0, %c0_i32_1 : i32, i32, i32
  }
  func.func @transform_4(%arg0: i32, %arg1: i32) -> (i32, i32) {
    %c0_i32 = arith.constant 0 : i32
    %c0_i32_0 = arith.constant 0 : i32
    %c0_i32_1 = arith.constant 0 : i32
    return %c0_i32, %c0_i32_0 : i32, i32
  }
  func.func @transform_5(%arg0: i32, %arg1: i32) -> (i32, i32, i32) {
    %c0_i32 = arith.constant 0 : i32
    %c0_i32_0 = arith.constant 0 : i32
    return %arg0, %arg1, %c0_i32 : i32, i32, i32
  }
  func.func @transform_6(%arg0: i32, %arg1: i32) -> (i32, i32, i32, i32) {
    %c0_i32 = arith.constant 0 : i32
    %c0_i32_0 = arith.constant 0 : i32
    %c0_i32_1 = arith.constant 0 : i32
    return %arg0, %c0_i32, %arg1, %c0_i32_0 : i32, i32, i32, i32
  }
}

</mosaic_0001>

<bundles_post_ra>
// kernel: tpu_custom_call.1
= control target key start
LH: loop header
LB: loop body
LE: loop exit
PB: predicated region body
PF: predicated region fallthrough
CT: control target
= control target key end

     0   :  { %s2771_s0 = inlined_call_operand.hbm [shape: f32[2,8,32], index: 0, kind: input, shape index: {}]   ;;  %s2772_s1 = inlined_call_operand.hbm [shape: f32[2,8,32], index: 1, kind: input, shape index: {}]   ;;  %s2773_s2 = inlined_call_operand.hbm [shape: f32[2,8,32], index: 2, kind: input, shape index: {}]   ;;  %s2774_s3 = inlined_call_operand.hbm [shape: f32[4,32,32], index: 3, kind: input, shape index: {}]   ;;  %s2775_s4 = inlined_call_operand.vmem [shape: f32[4,32], index: 4, kind: input, shape index: {}]   ;;  %s2776_s5 = inlined_call_operand.hbm [shape: f32[2,8,32], index: 5, kind: output, shape index: {0}]   ;;  %s2777_s6 = inlined_call_operand.hbm [shape: f32[2,4,8,8], index: 6, kind: output, shape index: {1}]  }
   0x1   :  { %2786 = sst [smem:[#allocation23_spill]] %s2772_s1 }
   0x2   :  { %12 = vsyncpa [#allocation3], 0 }
   0x3   :  { %14 = vsyncpa [#allocation3 + $0x1], 0 }
   0x4   :  { %15 = vsyncpa [#allocation6], 0 }
   0x5   :  { %17 = vsyncpa [#allocation6 + $0x1], 0 }
   0x6   :  { %18 = vsyncpa [#allocation9], 0 }
   0x7   :  { %19 = vsyncpa [#allocation4], 0 }
   0x8   :  { %21 = vsyncpa [#allocation4 + $0x1], 0 }
   0x9   :  { %22 = vsyncpa [#allocation12], 0 }
   0xa   :  { %24 = vsyncpa [#allocation12 + $0x1], 0  ;;  %s2380_s21 = smov 0   ;;  %s2382_s22 = smov 0  }
   0xb   :  { %s2384_s23 = smov 0   ;;  %s2386_s24 = smov 0  }
   0xc   :  { %s2388_s25 = smov 0   ;;  %s2390_s26 = smov 0  }
   0xd LB: > { %2787 = sst [smem:[#allocation18_spill]] %s2324_s25  ;;  %s42_s27 = sadd.s32 1, %s2324_s25  ;;  %s2328_s26 = sphi %s2390_s26, %s30_s26   ;;  %s2324_s25 = sphi %s2388_s25, %s2810_s25   ;;  %s2320_s24 = sphi %s2386_s24, %s2809_s24   ;;  %s2316_s23 = sphi %s2384_s23, %s2813_s23   ;;  %s2312_s22 = sphi %s2382_s22, %s2812_s22   ;;  %s2308_s21 = sphi %s2380_s21, %s2811_s21  }
   0xe   : > { %2788 = sst [smem:[#allocation19_spill]] %s2328_s26  ;;  %s51_s28 = sadd.s32 1, %s2316_s23 }
   0xf   : > { %p44_p0 = scmp.ge.s32.totalorder %s42_s27, 2  ;;  %p58_p1 = scmp.ne.s32.totalorder %s2316_s23, %s2312_s22 }
  0x10   : > { %p59_p2 = scmp.eq.s32.totalorder %s2328_s26, 0  ;;  %p2023_p5 = scmp.lt.s32.totalorder %s2328_s26, 2 }
  0x11   : > { %s2815_s27 = smov (%p44_p0, %s42_s27), 0  ;;  %s2778_s30 = sand.u32 1, %s2316_s23  }
  0x12   : > { %2789 = sst [smem:[#allocation20_spill]] %s2815_s27  ;;  %p60_p4 = por %p59_p2, %p58_p1 }
  0x13   : > { %s46_s29 = ssub.s32 %s2324_s25, %s2815_s27  ;;  %s2427_s7 = sshll.u32 %s2778_s30, 3 }
  0x14   : > { %p49_p6 = scmp.eq.s32.totalorder %s46_s29, 0  ;;  %s2430_s8 = sshll.u32 %s2324_s25, 7 }
  0x15   : > { %p2432_p7 = pnand %p2023_p5, %p60_p4  ;;  %s273_s11 = sand.u32 1, %s2328_s26  }
  0x16   : > { %s2437_s10 = scalar_select %p49_p6, %s2316_s23, %s51_s28  }
  0x17   : > { %s2792_s1 = sld [smem:[#allocation23_spill]]  ;;  %s277_s15 = scalar_lea.vmem [#allocation5], %s2427_s7 }
  0x18   : > { %2791 = sst [smem:[#allocation21_spill]] %s2437_s10  ;;  %s284_s16 = sshll.u32 %s277_s15, 4  ;;  %s285_s16 = int_to_ptr.vmem [resolvable:$true] %s284_s16 }
  0x19   : > { %s2445_s17 = scalar_lea.sflag [#allocation6], %s273_s11  ;;  %p2780_p8 = pneg %p2432_p7 }
  0x1a   : > { %s2113_s18 = scalar_lea.vmem %s285_s16, 128  ;;  %s2330_s19 = smov [#allocation5]  }
  0x1b   : > { %p2114_p9 = scmp.ne.s32.totalorder %s285_s16, %s2113_s18  ;;  %s2118_s20 = sshll.u32 %s2330_s19, 4  ;;  %s2119_s20 = int_to_ptr.vmem [resolvable:$false] %s2118_s20 }
  0x1c   : > { %s2120_s28 = scalar_lea.vmem %s2119_s20, 256  ;;  %p2121_p12 = scmp.lt.s32.totalorder %s285_s16, %s2119_s20 }
  0x1d   : > { %s282_s14 = scalar_lea.hbm %s2792_s1, %s2430_s8  ;;  %p2116_p10 = pnand %p2114_p9, %p2780_p8 }
  0x1e   : > { %p2122_p13 = scmp.lt.s32.totalorder %s2120_s28, %s2113_s18 }
  0x1f   : > { %p2117_p11 = pneg %p2116_p10 }
  0x20   : > { %p2123_p0 = por %p2122_p13, %p2121_p12 }
  0x22   : > { %p2124_p2 = pnand %p2123_p0, %p2117_p11 }
  0x24   : > { %2127 = shalt.err (!%p2124_p2)
}
  0x25   : > { %2011 = dma.hbm_to_vmem [thread:$0]  (!%p2432_p7), %s282_s14, 128, %s285_s16, %s2445_s17  }
  0x26   : > { %s2456_s29 = sadd.s32 4294967295, %s2328_s26   ;;  %s1808_s11 = sadd.s32 4294967294, %s2328_s26  }
  0x27   : > { %p64_p4 = scmp.ne.s32.totalorder %s2312_s22, %s2308_s21  ;;  %p2779_p5 = scmp.eq.s32.totalorder %s2456_s29, 0 }
  0x28   : > { %p184_p6 = scmp.eq.s32.totalorder %s2456_s29, 1  ;;  %p190_p9 = scmp.eq.s32.totalorder %s1808_s11, 1 }
  0x29   : > { %p1809_p10 = scmp.ge.s32.totalorder %s2328_s26, 1  ;;  %p2466_p11 = por %p2779_p5, %p64_p4 }
  0x2a   : > { %p2473_p12 = por %p184_p6, %p58_p1  ;;  %p2477_p13 = por %p190_p9, %p64_p4 }
  0x2b   : > { %p225_p0 = scmp.lt.s32.totalorder %s2328_s26, 3  ;;  %s2331_s16 = smov [#allocation8]  }
  0x2c   : > { %s2795_s14 = scalar_select %p2477_p13, 1, 0 }
  0x2d   : > { %p2482_p2 = pnand %p1809_p10, %p225_p0  ;;  %s237_s18 = sshll.u32 %s2331_s16, 4  ;;  %s238_s18 = int_to_ptr.vmem [resolvable:$true] %s237_s18 }
  0x2e   : > { %2796 = sst [smem:[#allocation22_spill]] %s2795_s14  ;;  %s258_s30 = scalar_lea.vmem [#allocation2], %s2427_s7 }
  0x2f   : > { %p2001_p3 = pneg %p2482_p2  ;;  %s266_s1 = sshll.u32 %s258_s30, 4  ;;  %s2499_s1 = int_to_ptr.vmem [resolvable:$true] %s266_s1 }
  0x30   : > { %s2139_s16 = scalar_lea.vmem %s238_s18, 2048  ;;  %p2147_p0 = scmp.lt.s32.totalorder %s238_s18, %s238_s18 }
  0x31   : > { %p2490_p1 = pnand %p2001_p3, %p2779_p5  ;;  %p2140_p6 = scmp.ne.s32.totalorder %s238_s18, %s2139_s16 }
  0x32   : > { %p2148_p3 = scmp.lt.s32.totalorder %s2139_s16, %s2139_s16 }
  0x33   : > { %p2130_p4 = pneg %p2490_p1 }
  0x34   : > { %p2149_p5 = por %p2148_p3, %p2147_p0 }
  0x35   : > { %p2142_p9 = pnand %p2140_p6, %p2130_p4 }
  0x37   : > { %p2143_p10 = pneg %p2142_p9 }
  0x39   : > { %p2150_p8 = pnand %p2149_p5, %p2143_p10 }
  0x3b   : > { %2153 = shalt.err (!%p2150_p8)
}
  0x3c   : > { %s2332_s27 = smov 128   ;;  %s2333_s30 = smov 8  }
  0x3d   : > { %2004 = dma.hbm_to_vmem [thread:$0]  (!%p2490_p1), %s2774_s3, 2048, %s238_s18, [#allocation9], %s2332_s27, %s2332_s27, %s2333_s30  }
  0x3e   : > { %s2799_s11 = sand.u32 1, %s2316_s23   ;;  %s2167_s10 = scalar_lea.vmem %s2499_s1, 128 }
  0x3f   : > { %s255_s25 = scalar_lea.sflag [#allocation3], %s2799_s11  ;;  %p2168_p4 = scmp.ne.s32.totalorder %s2499_s1, %s2167_s10 }
  0x40   : > { %p2800_p5 = pneg %p2432_p7  ;;  %s2334_s16 = smov [#allocation2]  }
  0x41   : > { %s2172_s26 = sshll.u32 %s2334_s16, 4  ;;  %s2173_s26 = int_to_ptr.vmem [resolvable:$false] %s2172_s26 }
  0x42   : > { %p2170_p8 = pnand %p2168_p4, %p2800_p5  ;;  %s2174_s14 = scalar_lea.vmem %s2173_s26, 256 }
  0x43   : > { %p2175_p9 = scmp.lt.s32.totalorder %s2499_s1, %s2173_s26  ;;  %p2176_p10 = scmp.lt.s32.totalorder %s2174_s14, %s2167_s10 }
  0x44   : > { %p2171_p6 = pneg %p2170_p8 }
  0x45   : > { %p2177_p0 = por %p2176_p10, %p2175_p9 }
  0x47   : > { %p2178_p3 = pnand %p2177_p0, %p2171_p6 }
  0x49   : > { %2181 = shalt.err (!%p2178_p3)
}
  0x4a   : > { %s2801_s19 = scalar_lea.hbm %s2771_s0, %s2430_s8  ;;  %s300_s26 = scalar_lea.hbm %s2773_s2, %s2430_s8 }
  0x4b   : > { %2008 = dma.hbm_to_vmem [thread:$0]  (!%p2432_p7), %s2801_s19, 128, %s2499_s1, %s255_s25  }
  0x4c   : > { %s295_s10 = scalar_lea.vmem [#allocation7], %s2427_s7  ;;  %p2802_p4 = pmov %p2800_p5 }
  0x4d   : > { %s302_s14 = sshll.u32 %s295_s10, 4  ;;  %s2335_s28 = smov [#allocation7]   ;;  %s303_s14 = int_to_ptr.vmem [resolvable:$true] %s302_s14 }
  0x4e   : > { %s2195_s20 = scalar_lea.vmem %s303_s14, 128  ;;  %s2200_s16 = sshll.u32 %s2335_s28, 4  ;;  %s2201_s16 = int_to_ptr.vmem [resolvable:$false] %s2200_s16 }
  0x4f   : > { %p2196_p1 = scmp.ne.s32.totalorder %s303_s14, %s2195_s20  ;;  %s2202_s27 = scalar_lea.vmem %s2201_s16, 256 }
  0x50   : > { %p2203_p6 = scmp.lt.s32.totalorder %s303_s14, %s2201_s16  ;;  %p2204_p9 = scmp.lt.s32.totalorder %s2202_s27, %s2195_s20 }
  0x51   : > { %p2198_p5 = pnand %p2196_p1, %p2802_p4 }
  0x52   : > { %p2205_p10 = por %p2204_p9, %p2203_p6 }
  0x53   : > { %p2199_p8 = pneg %p2198_p5 }
  0x55   : > { %p2206_p0 = pnand %p2205_p10, %p2199_p8 }
  0x57   : > { %2209 = shalt.err (!%p2206_p0)
}
  0x58   : > { %2014 = dma.hbm_to_vmem [thread:$0]  (!%p2432_p7), %s300_s26, 128, %s303_s14, %s2445_s17  }
  0x59   : > { %311 = sbr.rel (%p2482_p2) target bundleno = 2544 (0x9f0), region = 40  ;;  %s2538_s1 = sand.u32 (!%p2482_p2), 1, %s2312_s22  }
  0x5a   : > { %s2541_s25 = sshll.u32 (!%p2482_p2), %s2538_s1, 3  ;;  %s314_s7 = scalar_lea.sflag (!%p2482_p2), [#allocation3], %s2538_s1 }
  0x5b   : > { %s317_s8 = scalar_lea.vmem (!%p2482_p2), [#allocation2], %s2541_s25 }
  0x5e   : > { %2287 = dma.done.wait (%p2466_p11), %s314_s7, 128  }
  0x5f   : > { %2289 = vsyncadd (%p2466_p11), %s314_s7, 4294967168  ;;  %s322_s9 = sand.u32 1, %s2456_s29   ;;  %s326_s15 = scalar_lea.vmem [#allocation5], %s2541_s25 }
  0x60   : > { %s323_s17 = scalar_lea.sflag [#allocation6], %s322_s9 }
  0x61   : > { %2291 = dma.done.wait (%p2466_p11), %s323_s17, 256  }
  0x62   : > { %2293 = vsyncadd (%p2466_p11), %s323_s17, 4294967040  ;;  %s335_s18 = scalar_lea.vmem [#allocation7], %s2541_s25  ;;  %p2803_p7 = scmp.eq.s32.totalorder %s2456_s29, 0 }
  0x64   : > { %2295 = dma.done.wait (%p2803_p7), [#allocation9], 2048   ;;  %p2804_p2 = pmov %p2803_p7 }
  0x65   : > { %v2336_v0 = vmov 0.0   ;;  %vm2337_vm0 = vmmov 0   ;;  %v388_v1 = vld [vmem:[#allocation8 + $0x18] sm:$0xff]  ;;  %v387_v3 = vld [vmem:[#allocation8 + $0x10] sm:$0xff]  ;;  %v386_v5 = vld [vmem:[#allocation8 + $0x8] sm:$0xff]  ;;  %vm393_vm1 = vcmask 261120   ;;  %v389_v16 = vlaneseq }
  0x66   : > { %2297 = vsyncadd (%p2804_p2), [#allocation9], 4294965248  ;;  %1894 = vmatprep.subr.mxu0 %v2336_v0  ;;  %1905 = vmatprep.subr.mxu1 %v2336_v0  ;;  %v473_v2 = vld [vmem:[#allocation8 + $0x38] sm:$0xff]  ;;  %v472_v4 = vld [vmem:[#allocation8 + $0x30] sm:$0xff]  ;;  %vm639_vm2 = vcmask 64512   ;;  %s2338_s19 = smov 120  }
  0x67   : > { %1902 = vmatprep.mubr.msk.f32.mxu0 %vm2337_vm0, %v2336_v0  ;;  %1913 = vmatprep.mubr.msk.f32.mxu1 %vm2337_vm0, %v2336_v0  ;;  %v471_v6 = vld [vmem:[#allocation8 + $0x28] sm:$0xff]  ;;  %v385_v7 = vld [vmem:[#allocation8] sm:$0xff]  ;;  %v384_v9 = vld [vmem:[%s317_s8] sm:$0xff]  ;;  %v2593_v17 = vshrl.u32 %v389_v16, 7  ;;  %s2339_s11 = smov 112   ;;  %s1824_s30 = sshll.u32 %s2538_s1, 5 }
  0x68   : > { %1895 = vmatpush3.msra.mxu0 %v388_v1  ;;  %1906 = vmatpush3.msra.mxu1 %v473_v2  ;;  %v470_v8 = vld [vmem:[#allocation8 + $0x20] sm:$0xff]  ;;  %v556_v11 = vld [vmem:[#allocation8 + $0x58] sm:$0xff]  ;;  %v555_v12 = vld [vmem:[#allocation8 + $0x50] sm:$0xff]  ;;  %s2640_s26 = scalar_lea.vmem [#allocation11], %s1824_s30  ;;  %s2340_s10 = smov 104  }
  0x69   : > { %1896 = vmatprep.subr.mxu0 %v2336_v0  ;;  %1907 = vmatprep.subr.mxu1 %v2336_v0  ;;  %v468_v10 = vld [vmem:[%s326_s15] sm:$0xff]  ;;  %v551_v15 = vld [vmem:[%s335_s18] sm:$0xff]  ;;  %v391_v18 = vsub.s32 0, %v2593_v17  ;;  %v476_v19 = vsub.s32 1, %v2593_v17  ;;  %v559_v30 = vsub.s32 2, %v2593_v17  ;;  %s1854_s14 = sshll.u32 %s2320_s24, 9 }
  0x6a   : > { %1897 = vmatpush3.msra.mxu0 %v387_v3  ;;  %1908 = vmatpush3.msra.mxu1 %v472_v4  ;;  %v554_v13 = vld [vmem:[#allocation8 + $0x48] sm:$0xff]  ;;  %v553_v14 = vld [vmem:[#allocation8 + $0x40] sm:$0xff]  ;;  %v2600_v20 = vld [vmem:[%s2775_s4] sm:$0xf]  ;;  %s1637_s20 = sshll.u32 %s2640_s26, 4  ;;  %s2700_s27 = scalar_lea.hbm %s2777_s6, %s1854_s14  ;;  %s2702_s20 = int_to_ptr.vmem [resolvable:$true] %s1637_s20 }
  0x6b   : > { %1898 = vmatprep.subr.mxu0 %v2336_v0  ;;  %1909 = vmatprep.subr.mxu1 %v2336_v0  ;;  %v392_v21 = vrot.slane %v2600_v20, %v391_v18  ;;  %v477_v22 = vrot.slane %v2600_v20, %v476_v19  ;;  %v560_v31 = vrot.slane %v2600_v20, %v559_v30  ;;  %v636_v56 = vld [vmem:[#allocation8 + $0x68] sm:$0xff]  ;;  %v635_v61 = vld [vmem:[#allocation8 + $0x60] sm:$0xff]  ;;  %s1609_s7 = scalar_lea.sflag [#allocation12], %s2538_s1  ;;  %s2210_s8 = scalar_lea.vmem %s2702_s20, 512 }
  0x6c   : > { %1899 = vmatpush3.msra.mxu0 %v386_v5  ;;  %1910 = vmatpush3.msra.mxu1 %v471_v6  ;;  %p2211_p11 = scmp.ne.s32.totalorder %s2702_s20, %s2210_s8  ;;  %s2341_s9 = smov [#allocation11]  }
  0x6d   : > { %1900 = vmatprep.subr.mxu0 %v2336_v0  ;;  %1911 = vmatprep.subr.mxu1 %v2336_v0  ;;  %s2214_s17 = sshll.u32 %s2341_s9, 4  ;;  %s2215_s17 = int_to_ptr.vmem [resolvable:$false] %s2214_s17 }
  0x6e   : > { %1901 = vmatpush3.msra.mxu0 %v385_v7  ;;  %1912 = vmatpush3.msra.mxu1 %v470_v8  ;;  %p2212_p3 = pnand %p2211_p11, %p2473_p12  ;;  %s2216_s15 = scalar_lea.vmem %s2215_s17, 1024 }
  0x6f   : > { %1903 = vmatmul.mubr.msk.f32.vlgmr.msra.gmra.mxu0 %vm393_vm1, %v384_v9  ;;  %1914 = vmatmul.mubr.msk.f32.vlgmr.msra.gmra.mxu1 %vm393_vm1, %v468_v10  ;;  %p2217_p4 = scmp.lt.s32.totalorder %s2702_s20, %s2215_s17  ;;  %p2218_p5 = scmp.lt.s32.totalorder %s2216_s15, %s2210_s8 }
  0x70   : > { %1927 = vmatprep.subr.mxu1 %v2336_v0  ;;  %1929 = vmatprep.mubr.msk.f32.mxu1 %vm2337_vm0, %v2336_v0  ;;  %p2213_p1 = pneg %p2212_p3 }
  0x71   : > { %1916 = vmatprep.subr.mxu0 %v2336_v0  ;;  %1924 = vmatprep.mubr.msk.f32.mxu0 %vm2337_vm0, %v2336_v0  ;;  %p2219_p8 = por %p2218_p5, %p2217_p4 }
  0x72   : > { %1917 = vmatpush3.msra.mxu0 %v556_v11 }
  0x73   : > { %1918 = vmatprep.subr.mxu0 %v2336_v0  ;;  %p2220_p6 = pnand %p2219_p8, %p2213_p1 }
  0x74   : > { %1919 = vmatpush3.msra.mxu0 %v555_v12 }
  0x75   : > { %1920 = vmatprep.subr.mxu0 %v2336_v0 }
  0x76   : > { %1921 = vmatpush3.msra.mxu0 %v554_v13 }
  0x77   : > { %1922 = vmatprep.subr.mxu0 %v2336_v0 }
  0x78   : > { %1923 = vmatpush3.msra.mxu0 %v553_v14 }
  0x79   : > { %1925 = vmatmul.mubr.msk.f32.vlgmr.msra.gmra.mxu0 %vm393_vm1, %v551_v15  ;;  %1937 = vmatprep.subr.mxu0 %v2336_v0 }
  0x7a   : > { %1939 = vmatprep.mubr.msk.f32.mxu0 %vm2337_vm0, %v2336_v0 }
 0x12f   : > { %v463_v23 = vpop.f32.mrf.mxu0  ;;  %v547_v24 = vpop.f32.mrf.mxu1 }
 0x130   : > { %v464_v25 = vadd.f32 %v463_v23, %v392_v21  ;;  %v2604_v26 = vadd.f32 %v547_v24, %v477_v22 }
 0x131   : > { %v1904_v27 = vpop.f32.mrf.mxu0  ;;  %v1915_v28 = vpop.f32.mrf.mxu1 }
 0x132   : > { %v2606_v29 = vmul.f32 0.35355338, %v464_v25  ;;  %803 = vrot.lane.b32.xlu0 %v2604_v26, %s2338_s19  ;;  %1928 = vmatpush3.xpose.msk.msra.mxu1 %vm639_vm2, %v2604_v26  ;;  %v637_v25 = vld [vmem:[#allocation8 + $0x70] sm:$0xff] }
 0x133   : > { %1932 = vmatprep.subr.mxu1 %v2336_v0 }
 0x135   : > { %1930 = vmatmul.mubr.msk.f32.vlgmr.msra.gmra.mxu1 %vm639_vm2, %v2606_v29 }
 0x136   : > { %801 = vrot.lane.b32.xlu0 %v2606_v29, %s2338_s19  ;;  %1934 = vmatprep.mubr.msk.f32.mxu1 %vm2337_vm0, %v2336_v0 }
 0x139   : > { %v630_v32 = vpop.f32.mrf.mxu0 }
 0x13a   : > { %v2621_v33 = vadd.f32 %v630_v32, %v560_v31 }
 0x13b   : > { %v1926_v34 = vpop.f32.mrf.mxu0 }
 0x13c   : > { %1933 = vmatpush3.msra.mxu1 %v2621_v33 }
 0x13d   : > { %1942 = vmatprep.subr.mxu1 %v2336_v0 }
 0x1a4   : > { %v804_v35 = vpop.permute.xlu0 %803 }
 0x1a5   : > { %1938 = vmatpush3.xpose.msk.msra.mxu0 %vm639_vm2, %v804_v35 }
 0x1a6   : > { %1947 = vmatprep.subr.mxu0 %v2336_v0 }
 0x1a8   : > { %v802_v36 = vpop.permute.xlu0 %801 }
 0x1a9   : > { %1940 = vmatmul.mubr.msk.f32.vlgmr.msra.gmra.mxu0 %vm639_vm2, %v802_v36 }
 0x1aa   : > { %1949 = vmatprep.mubr.msk.f32.mxu0 %vm2337_vm0, %v2336_v0  ;;  %1948 = vmatpush3.msra.mxu0 %v636_v56 }
 0x1ab   : > { %1957 = vmatprep.subr.mxu0 %v2336_v0 }
 0x1f5   : > { %v712_v37 = vpop.f32.mrf.mxu1 }
 0x1f6   : > { %v716_v38 = vsel %vm639_vm2, %v712_v37, -inf }
 0x1f7   : > { %717 = vmax.xlane.f32.xlu1 %v716_v38  ;;  %v1931_v39 = vpop.f32.mrf.mxu1 }
 0x269   : > { %v875_v40 = vpop.f32.mrf.mxu0 }
 0x26a   : > { %v879_v41 = vsel %vm639_vm2, %v875_v40, -inf }
 0x26b   : > { %v1941_v42 = vpop.f32.mrf.mxu0  ;;  %880 = vmax.xlane.f32.xlu1 %v879_v41 }
 0x280   : > { %v718_v43 = vpop.xlane.xlu1 %717 }
 0x281   : > { %v719_v44 = vsub.f32 %v712_v37, %v718_v43  ;;  %v638_v37 = vld [vmem:[#allocation8 + $0x78] sm:$0xff] }
 0x283   : > { %v720_v45 = vmul.f32 1.442695, %v719_v44 }
 0x285   : > { %2084 = vpow2.f32 %v720_v45 }
 0x292   : > { %v2085_v46 = vpop.eup %2084 }
 0x293   : > { %v722_v47 = vsel %vm639_vm2, %v2085_v46, 0.0 }
 0x294   : > { %723 = vadd.xlane.f32.xlu0 %v722_v47 }
 0x2aa   : > { %1206 = vrot.lane.b32.xlu0 %v2621_v33, %s2339_s11 }
 0x2f4   : > { %v881_v48 = vpop.xlane.xlu1 %880 }
 0x2f5   : > { %v882_v49 = vsub.f32 %v875_v40, %v881_v48 }
 0x2f7   : > { %v883_v50 = vmul.f32 1.442695, %v882_v49 }
 0x2f9   : > { %2086 = vpow2.f32 %v883_v50 }
 0x306   : > { %v2087_v51 = vpop.eup %2086 }
 0x307   : > { %v885_v52 = vsel %vm639_vm2, %v2087_v51, 0.0 }
 0x308   : > { %886 = vadd.xlane.f32.xlu1 %v885_v52 }
 0x319   : > { %893 = vrot.lane.b32.xlu1 %v2621_v33, %s2338_s19 }
 0x31d   : > { %v724_v53 = vpop.xlane.xlu0 %723  ;;  %1117 = vrot.lane.b32.xlu1 %v2604_v26, %s2339_s11 }
 0x31e   : > { %2088 = vrcp.f32 %v724_v53 }
 0x321   : > { %1115 = vrot.lane.b32.xlu1 %v2606_v29, %s2339_s11  ;;  %v1207_v63 = vpop.permute.xlu0 %1206 }
 0x32b   : > { %v2089_v54 = vpop.eup %2088 }
 0x32c   : > { %v726_v55 = vmul.f32 %v2089_v54, %v2085_v46 }
 0x32e   : > { %727 = vst.msk [vmem:[%s2640_s26] sm:$0xff] %vm639_vm2, %v726_v55  ;;  %1935 = vmatmul.mubr.msk.f32.vlgmr.msra.gmra.mxu1 %vm639_vm2, %v726_v55 }
 0x32f   : > { %1944 = vmatprep.mubr.msk.f32.mxu1 %vm2337_vm0, %v2336_v0 }
 0x391   : > { %v887_v57 = vpop.xlane.xlu1 %886 }
 0x392   : > { %2090 = vrcp.f32 %v887_v57 }
 0x395   : > { %v894_v58 = vpop.permute.xlu1 %893 }
 0x396   : > { %1943 = vmatpush3.msra.mxu1 %v894_v58 }
 0x397   : > { %1952 = vmatprep.subr.mxu1 %v2336_v0 }
 0x399   : > { %v1118_v2 = vpop.permute.xlu1 %1117 }
 0x39d   : > { %v1116_v5 = vpop.permute.xlu1 %1115 }
 0x39f   : > { %v2091_v59 = vpop.eup %2090 }
 0x3a0   : > { %v889_v60 = vmul.f32 %v2091_v59, %v2087_v51 }
 0x3a2   : > { %1833 = vst.msk [vmem:[%s2640_s26 + $0x8] sm:$0xff] %vm639_vm2, %v889_v60  ;;  %1945 = vmatmul.mubr.msk.f32.vlgmr.msra.gmra.mxu1 %vm639_vm2, %v889_v60 }
 0x3a3   : > { %1953 = vmatpush3.msra.mxu1 %v635_v61  ;;  %1954 = vmatprep.mubr.msk.f32.mxu1 %vm2337_vm0, %v2336_v0 }
 0x3a4   : > { %1962 = vmatprep.subr.mxu1 %v2336_v0 }
 0x3ee   : > { %v797_v62 = vpop.f32.mrf.mxu1 }
 0x3ef   : > { %1955 = vmatmul.mubr.msk.f32.vlgmr.msra.gmra.mxu1 %vm639_vm2, %v797_v62 }
 0x3f0   : > { %1963 = vmatpush3.msra.mxu1 %v1207_v63  ;;  %v1936_v1 = vpop.f32.mrf.mxu1  ;;  %1964 = vmatprep.mubr.msk.f32.mxu1 %vm2337_vm0, %v2336_v0 }
 0x3f1   : > { %1972 = vmatprep.subr.mxu1 %v2336_v0 }
 0x462   : > { %v965_v3 = vpop.f32.mrf.mxu1 }
 0x463   : > { %1950 = vmatmul.mubr.msk.f32.vlgmr.msra.gmra.mxu0 %vm639_vm2, %v965_v3 }
 0x464   : > { %1958 = vmatpush3.xpose.msk.msra.mxu0 %vm639_vm2, %v1118_v2  ;;  %v1946_v4 = vpop.f32.mrf.mxu1  ;;  %1959 = vmatprep.mubr.msk.f32.mxu0 %vm2337_vm0, %v2336_v0 }
 0x465   : > { %1967 = vmatprep.subr.mxu0 %v2336_v0 }
 0x467   : > { %1960 = vmatmul.mubr.msk.f32.vlgmr.msra.gmra.mxu0 %vm639_vm2, %v1116_v5 }
 0x468   : > { %1969 = vmatprep.mubr.msk.f32.mxu0 %vm2337_vm0, %v2336_v0  ;;  %1968 = vmatpush3.msra.mxu0 %v637_v25 }
 0x469   : > { %1977 = vmatprep.subr.mxu0 %v2336_v0 }
 0x4af   : > { %v1111_v6 = vpop.f32.mrf.mxu1 }
 0x4b1   : > { %v1956_v7 = vpop.f32.mrf.mxu1 }
 0x523   : > { %v1038_v8 = vpop.f32.mrf.mxu0 }
 0x525   : > { %v1951_v9 = vpop.f32.mrf.mxu0 }
 0x527   : > { %v1189_v10 = vpop.f32.mrf.mxu0 }
 0x528   : > { %v1193_v11 = vsel %vm639_vm2, %v1189_v10, -inf }
 0x529   : > { %1194 = vmax.xlane.f32.xlu1 %v1193_v11  ;;  %v1961_v12 = vpop.f32.mrf.mxu0 }
 0x5b2   : > { %v1195_v13 = vpop.xlane.xlu1 %1194 }
 0x5b3   : > { %v1196_v14 = vsub.f32 %v1189_v10, %v1195_v13 }
 0x5b5   : > { %v1197_v15 = vmul.f32 1.442695, %v1196_v14 }
 0x5b7   : > { %2092 = vpow2.f32 %v1197_v15 }
 0x5c4   : > { %v2093_v16 = vpop.eup %2092 }
 0x5c5   : > { %v1199_v18 = vsel %vm639_vm2, %v2093_v16, 0.0 }
 0x5c6   : > { %1200 = vadd.xlane.f32.xlu0 %v1199_v18 }
 0x5dc   : > { %1358 = vrot.lane.b32.xlu0 %v2604_v26, %s2340_s10 }
 0x5e0   : > { %1356 = vrot.lane.b32.xlu0 %v2606_v29, %s2340_s10 }
 0x64f   : > { %v1201_v19 = vpop.xlane.xlu0 %1200 }
 0x650   : > { %2094 = vrcp.f32 %v1201_v19 }
 0x653   : > { %v1359_v22 = vpop.permute.xlu0 %1358 }
 0x657   : > { %v1357_v24 = vpop.permute.xlu0 %1356 }
 0x65d   : > { %v2095_v21 = vpop.eup %2094 }
 0x65e   : > { %v1203_v23 = vmul.f32 %v2095_v21, %v2093_v16 }
 0x660   : > { %1839 = vst.msk [vmem:[%s2640_s26 + $0x10] sm:$0xff] %vm639_vm2, %v1203_v23  ;;  %1965 = vmatmul.mubr.msk.f32.vlgmr.msra.gmra.mxu1 %vm639_vm2, %v1203_v23 }
 0x661   : > { %1973 = vmatpush3.xpose.msk.msra.mxu1 %vm639_vm2, %v1359_v22  ;;  %1974 = vmatprep.mubr.msk.f32.mxu1 %vm2337_vm0, %v2336_v0 }
 0x662   : > { %1982 = vmatprep.subr.mxu1 %v2336_v0 }
 0x664   : > { %1975 = vmatmul.mubr.msk.f32.vlgmr.msra.gmra.mxu1 %vm639_vm2, %v1357_v24 }
 0x665   : > { %1984 = vmatprep.mubr.msk.f32.mxu1 %vm2337_vm0, %v2336_v0  ;;  %1983 = vmatpush3.msra.mxu1 %v638_v37 }
 0x720   : > { %v1278_v26 = vpop.f32.mrf.mxu1 }
 0x721   : > { %1970 = vmatmul.mubr.msk.f32.vlgmr.msra.gmra.mxu0 %vm639_vm2, %v1278_v26 }
 0x722   : > { %v1966_v27 = vpop.f32.mrf.mxu1  ;;  %1979 = vmatprep.mubr.msk.f32.mxu0 %vm2337_vm0, %v2336_v0  ;;  %v1112_v0 = vadd.f32 %v1111_v6, %v1038_v8 }
 0x724   : > { %v1430_v28 = vpop.f32.mrf.mxu1 }
 0x725   : > { %v1434_v29 = vsel %vm639_vm2, %v1430_v28, -inf }
 0x726   : > { %1435 = vmax.xlane.f32.xlu0 %v1434_v29  ;;  %v1976_v30 = vpop.f32.mrf.mxu1 }
 0x7af   : > { %v1436_v31 = vpop.xlane.xlu0 %1435 }
 0x7b0   : > { %v1437_v32 = vsub.f32 %v1430_v28, %v1436_v31 }
 0x7b2   : > { %v1438_v34 = vmul.f32 1.442695, %v1437_v32 }
 0x7b4   : > { %2096 = vpow2.f32 %v1438_v34 }
 0x7c1   : > { %v2097_v35 = vpop.eup %2096 }
 0x7c2   : > { %v1440_v36 = vsel %vm639_vm2, %v2097_v35, 0.0 }
 0x7c3   : > { %1441 = vadd.xlane.f32.xlu1 %v1440_v36 }
 0x7d4   : > { %1447 = vrot.lane.b32.xlu1 %v2621_v33, %s2340_s10 }
 0x7e1   : > { %v1351_v38 = vpop.f32.mrf.mxu0 }
 0x7e2   : > { %v1355_v39 = vadd.f32 %v1351_v38, %v1112_v0 }
 0x7e3   : > { %v1971_v40 = vpop.f32.mrf.mxu0 }
 0x84c   : > { %v1442_v41 = vpop.xlane.xlu1 %1441 }
 0x84d   : > { %2098 = vrcp.f32 %v1442_v41 }
 0x850   : > { %v1448_v42 = vpop.permute.xlu1 %1447 }
 0x851   : > { %1978 = vmatpush3.msra.mxu0 %v1448_v42 }
 0x85a   : > { %v2099_v43 = vpop.eup %2098 }
 0x85b   : > { %v1444_v44 = vmul.f32 %v2099_v43, %v2097_v35 }
 0x85d   : > { %1844 = vst.msk [vmem:[%s2640_s26 + $0x18] sm:$0xff] %vm639_vm2, %v1444_v44  ;;  %1980 = vmatmul.mubr.msk.f32.vlgmr.msra.gmra.mxu0 %vm639_vm2, %v1444_v44 }
 0x91d   : > { %v1519_v33 = vpop.f32.mrf.mxu0 }
 0x91e   : > { %1985 = vmatmul.mubr.msk.f32.vlgmr.msra.gmra.mxu1 %vm639_vm2, %v1519_v33 }
 0x91f   : > { %v1981_v45 = vpop.f32.mrf.mxu0 }
 0x920   : > { %2223 = shalt.err (!%p2220_p6)
}
 0x921   : > { %s2224_s18 = scalar_lea.hbm %s2700_s27, 512  ;;  %s2228_s19 = scalar_lea.hbm %s2777_s6, 1024 }
 0x922   : > { %p2225_p9 = scmp.ne.s32.totalorder %s2700_s27, %s2224_s18  ;;  %p2229_p7 = scmp.lt.s32.totalorder %s2700_s27, %s2777_s6 }
 0x923   : > { %p2230_p2 = scmp.lt.s32.totalorder %s2228_s19, %s2224_s18 }
 0x924   : > { %p2226_p10 = pnand %p2225_p9, %p2473_p12 }
 0x925   : > { %p2231_p11 = por %p2230_p2, %p2229_p7 }
 0x926   : > { %p2227_p0 = pneg %p2226_p10 }
 0x928   : > { %p2232_p3 = pnand %p2231_p11, %p2227_p0 }
 0x92a   : > { %2235 = shalt.err (!%p2232_p3)
}
 0x92b   : > { %s2342_s26 = smov 128   ;;  %s2343_s10 = smov 8   ;;  %v1599_v46 = vsub.s32 3, %v2593_v17 }
 0x92c   : > { %1998 = dma.vmem_to_hbm [thread:$0]  (%p2473_p12), %s2702_s20, 512, %s2700_s27, %s1609_s7, %s2342_s26, %s2342_s26, %s2343_s10  }
 0x92d   : > { %v1600_v47 = vrot.slane %v2600_v20, %v1599_v46  ;;  %s1849_s14 = sshll.u32 %s2320_s24, 7  ;;  %s375_s28 = scalar_lea.vmem [#allocation10], %s2541_s25 }
 0x92e   : > { %s1623_s16 = sshll.u32 %s375_s28, 4  ;;  %s1621_s17 = scalar_lea.hbm %s2776_s5, %s1849_s14  ;;  %s1624_s16 = int_to_ptr.vmem [resolvable:$true] %s1623_s16 }
 0x92f   : > { %s1604_s20 = scalar_lea.sflag [#allocation4], %s2538_s1  ;;  %s2236_s27 = scalar_lea.vmem %s1624_s16, 128 }
 0x930   : > { %p2237_p1 = scmp.ne.s32.totalorder %s1624_s16, %s2236_s27  ;;  %s2344_s7 = smov [#allocation10]  }
 0x931   : > { %s2240_s24 = sshll.u32 %s2344_s7, 4  ;;  %s2241_s24 = int_to_ptr.vmem [resolvable:$false] %s2240_s24 }
 0x932   : > { %p2238_p4 = pnand %p2237_p1, %p2473_p12  ;;  %s2242_s25 = scalar_lea.vmem %s2241_s24, 256 }
 0x933   : > { %p2243_p8 = scmp.lt.s32.totalorder %s1624_s16, %s2241_s24  ;;  %p2244_p6 = scmp.lt.s32.totalorder %s2242_s25, %s2236_s27 }
 0x934   : > { %p2239_p5 = pneg %p2238_p4 }
 0x935   : > { %p2245_p9 = por %p2244_p6, %p2243_p8 }
 0x937   : > { %p2246_p10 = pnand %p2245_p9, %p2239_p5 }
 0x9de   : > { %v1592_v48 = vpop.f32.mrf.mxu1 }
 0x9df   : > { %v1596_v49 = vadd.f32 %v1592_v48, %v1355_v39 }
 0x9e0   : > { %v1986_v50 = vpop.f32.mrf.mxu1 }
 0x9e1   : > { %v1601_v51 = vadd.f32 %v1600_v47, %v1596_v49 }
 0x9e3   : > { %1602 = vst.msk [vmem:[%s375_s28] sm:$0xff] %vm393_vm1, %v1601_v51 }
 0x9e4   : > { %2249 = shalt.err (!%p2246_p10)
}
 0x9e5   : > { %s2250_s15 = scalar_lea.hbm %s1621_s17, 128  ;;  %s2254_s29 = scalar_lea.hbm %s2776_s5, 256 }
 0x9e6   : > { %p2251_p0 = scmp.ne.s32.totalorder %s1621_s17, %s2250_s15  ;;  %p2255_p11 = scmp.lt.s32.totalorder %s1621_s17, %s2776_s5 }
 0x9e7   : > { %p2256_p3 = scmp.lt.s32.totalorder %s2254_s29, %s2250_s15 }
 0x9e8   : > { %p2252_p7 = pnand %p2251_p0, %p2473_p12 }
 0x9e9   : > { %p2257_p1 = por %p2256_p3, %p2255_p11 }
 0x9ea   : > { %p2253_p2 = pneg %p2252_p7 }
 0x9ec   : > { %p2258_p4 = pnand %p2257_p1, %p2253_p2 }
 0x9ee   : > { %2261 = shalt.err (!%p2258_p4)
}
 0x9ef   : > { %1997 = dma.vmem_to_hbm [thread:$0]  (%p2473_p12), %s1624_s16, 128, %s1621_s17, %s1604_s20  }
 0x9f0 PF: > { %s2806_s30 = sld [smem:[#allocation19_spill]]  ;;  %s1652_s26 = sand.u32 1, %s2308_s21  }
 0x9f1   : > { %s1653_s10 = scalar_lea.sflag [#allocation4], %s1652_s26 }
 0x9f6   : > { %p2807_p5 = scmp.ge.s32.totalorder %s2806_s30, 2 }
 0x9f8   : > { %p2016_p8 = pnand %p2807_p5, %p2477_p13 }
 0x9fa   : > { %p2017_p6 = pneg %p2016_p8 }
 0x9fc   : > { %2299 = dma.done.wait (%p2017_p6), %s1653_s10, 128  }
 0x9fd   : > { %2301 = vsyncadd (%p2017_p6), %s1653_s10, 4294967168  ;;  %s1662_s14 = scalar_lea.sflag [#allocation12], %s1652_s26 }
 0x9fe   : > { %2303 = dma.done.wait (%p2017_p6), %s1662_s14, 512  }
 0x9ff   : > { %2305 = vsyncadd (%p2017_p6), %s1662_s14, 4294966784  ;;  %s30_s26 = sadd.s32 1, %s2806_s30   ;;  %s2808_s13 = sld [smem:[#allocation21_spill]] }
 0xa00   : > { %p27_p9 = scmp.ge.s32.totalorder %s30_s26, 4   ;;  %s2809_s24 = sld [smem:[#allocation18_spill]] }
 0xa01   : > { %s2810_s25 = sld [smem:[#allocation20_spill]]  ;;  %s2811_s21 = smov %s2312_s22 }
 0xa02   : > { %s2812_s22 = smov %s2316_s23  ;;  %29 = sbr.rel (!%p27_p9) target bundleno = 13 (0xd), region = 136 }
 0xa05   : > { %s2813_s23 = smov %s2808_s13 }
 0xa07   :  { %1667 = vsyncpa [#allocation3], 1 }
 0xa08   :  { %1669 = vsyncpa [#allocation3 + $0x1], 1 }
 0xa09   :  { %1670 = vsyncpa [#allocation6], 1 }
 0xa0a   :  { %1672 = vsyncpa [#allocation6 + $0x1], 1 }
 0xa0b   :  { %1673 = vsyncpa [#allocation9], 1 }
 0xa0c   :  { %1674 = vsyncpa [#allocation4], 1 }
 0xa0d   :  { %1676 = vsyncpa [#allocation4 + $0x1], 1 }
 0xa0e   :  { %1677 = vsyncpa [#allocation12], 1 }
 0xa0f   :  { %1679 = vsyncpa [#allocation12 + $0x1], 1 }

</bundles_post_ra>
